<compile_context>
chip_gen: v6e
topology: v6e:2x2x1
jax: 0.10.0
libtpu: 0.0.40
codegen_flags: <defaults>
</compile_context>

<pallas_src>
import jax
import jax.numpy as jnp
from jax.experimental import pallas as pl
from jax.experimental.pallas import tpu as pltpu

LANE = 128
SUB = 8                     # f32 sublane tile
ROW_ALIGN = 32              # covers f32 / bf16 / int8 sublane packing
TARGET_BLOCK_ROWS = 2048    # 1 MiB f32 per input block (v7x-safe VMEM budget)
NUM_SHARDS = 2              # megacore split on v7x; harmless elsewhere
VMEM_LIMIT = 32 * 1024 * 1024


def _round_up(x, m):
    return (x + m - 1) // m * m


def _ceil_div(a, b):
    return -(-a // b)


# ------------------------- kernel factories -------------------------

def _make_masked_kernel(has_w, has_e):
    def kernel(*refs):
        x_ref, y_ref, m_ref = refs[0], refs[1], refs[2]
        k = 3
        w_ref = None
        e_ref = None
        if has_w:
            w_ref = refs[k]; k += 1
        if has_e:
            e_ref = refs[k]; k += 1
        lsum_ref, msum_ref = refs[k], refs[k + 1]

        # Per-shard accumulator init (outputs resident across the inner axis).
        @pl.when(pl.program_id(1) == 0)
        def _():
            lsum_ref[...] = jnp.zeros_like(lsum_ref)
            msum_ref[...] = jnp.zeros_like(msum_ref)

        loss = jnp.abs(x_ref[...].astype(jnp.float32)
                       - y_ref[...].astype(jnp.float32))
        if has_e:
            loss = loss * e_ref[...].astype(jnp.float32)
        if has_w:
            loss = loss * w_ref[...].astype(jnp.float32)
        m = m_ref[...].astype(jnp.float32)
        loss = loss * m

        # (block_rows, 128) -> (block_rows/8, 8, 128); summing the leading axis
        # is plain vreg-wise VPU adds -> no cross-lane work in the hot loop.
        lsum_ref[...] += jnp.sum(loss.reshape(-1, SUB, LANE), axis=0)
        msum_ref[...] += jnp.sum(m.reshape(-1, SUB, LANE), axis=0)

    return kernel


def _make_unmasked_kernel(has_w, has_e):
    def kernel(*refs):
        x_ref, y_ref = refs[0], refs[1]
        k = 2
        w_ref = None
        e_ref = None
        if has_w:
            w_ref = refs[k]; k += 1
        if has_e:
            e_ref = refs[k]; k += 1
        sum_ref = refs[k]

        @pl.when(pl.program_id(1) == 0)
        def _():
            sum_ref[...] = jnp.zeros_like(sum_ref)

        loss = jnp.abs(x_ref[...].astype(jnp.float32)
                       - y_ref[...].astype(jnp.float32))
        if has_e:
            loss = loss * e_ref[...].astype(jnp.float32)
        if has_w:
            loss = loss * w_ref[...].astype(jnp.float32)

        # (1, block_rows, 128) -> (1, block_rows/8, 8, 128) -> (1, 8, 128)
        sum_ref[...] += jnp.sum(loss.reshape(1, -1, SUB, LANE), axis=1)

    return kernel


# ------------------------- wrapper -------------------------

def mask_loss(X, Y, mask=None, weight=None, ema_mask=None):
    """Pallas implementation of Mask_loss.forward (main_loss = L1, reduction='none')."""
    assert X.ndim == 4 and X.shape == Y.shape
    B, C, H, W = X.shape
    dt = X.dtype
    Y = Y.astype(dt)

    has_w = weight is not None
    has_e = ema_mask is not None

    # TODO(synk): broadcastable (smaller) mask/weight/ema are materialized to
    # X's full shape in the wrapper; indexing them via their own BlockSpecs
    # would save HBM traffic but is not implemented here.
    def _full(a):
        a = a.astype(dt)
        if a.shape != X.shape:
            a = jnp.broadcast_to(a, X.shape)
        return a

    w = _full(weight) if has_w else None
    e = _full(ema_mask) if has_e else None

    if mask is not None:
        assert mask.ndim in (3, 4), "mask must be 3-D or 4-D"
        mask_size = 1
        for d in mask.shape:
            mask_size *= int(d)
        m = _full(mask)

        total = B * C * H * W
        rows_needed = _ceil_div(total, LANE)
        block_rows = min(TARGET_BLOCK_ROWS, _round_up(rows_needed, ROW_ALIGN))
        block_elems = block_rows * LANE
        n_blocks = _ceil_div(total, block_elems)
        num_shards = min(NUM_SHARDS, n_blocks)
        n_blocks = _round_up(n_blocks, num_shards)
        blocks_per_shard = n_blocks // num_shards
        padded_total = n_blocks * block_elems
        padded_rows = n_blocks * block_rows

        def _flat(a):
            a = a.reshape(-1)
            pad = padded_total - total
            if pad:
                a = jnp.pad(a, (0, pad))     # pad mask=0 -> no contribution
            return a.reshape(padded_rows, LANE)

        inputs = [_flat(X), _flat(Y), _flat(m)]
        if has_w:
            inputs.append(_flat(w))
        if has_e:
            inputs.append(_flat(e))

        in_block = pl.BlockSpec((block_rows, LANE),
                                lambda c, i: (c * blocks_per_shard + i, 0))
        out_block = pl.BlockSpec((SUB, LANE), lambda c, i: (c, 0))

        lpart, mpart = pl.pallas_call(
            _make_masked_kernel(has_w, has_e),
            out_shape=(jax.ShapeDtypeStruct((num_shards * SUB, LANE), jnp.float32),
                       jax.ShapeDtypeStruct((num_shards * SUB, LANE), jnp.float32)),
            grid=(num_shards, blocks_per_shard),
            in_specs=[in_block] * len(inputs),
            out_specs=(out_block, out_block),
            compiler_params=pltpu.CompilerParams(
                dimension_semantics=("parallel", "arbitrary"),
                vmem_limit_bytes=VMEM_LIMIT),
        )(*inputs)

        loss_sum = jnp.sum(lpart)
        # Kernel summed the *broadcast* mask; recover sum of the original mask
        # (PyTorch sums the un-broadcast mask).
        bcast_factor = float(total) / float(mask_size)
        mask_sum = jnp.sum(mpart) / bcast_factor
        if mask.ndim == 4:
            size = mask_sum / mask.shape[1] * C
        else:  # 3-D mask: size = sum(mask) * loss.shape[1]
            size = mask_sum * C
        return loss_sum / size

    else:
        chw = C * H * W
        rows_u = _ceil_div(chw, LANE)
        block_rows = min(TARGET_BLOCK_ROWS, _round_up(rows_u, ROW_ALIGN))
        block_elems = block_rows * LANE
        n_blocks = _ceil_div(chw, block_elems)
        padded_chw = n_blocks * block_elems
        padded_rows = n_blocks * block_rows

        def _r3(a):
            a = a.reshape(B, chw)
            pad = padded_chw - chw
            if pad:
                a = jnp.pad(a, ((0, 0), (0, pad)))   # pad loss terms are 0
            return a.reshape(B, padded_rows, LANE)

        inputs = [_r3(X), _r3(Y)]
        if has_w:
            inputs.append(_r3(w))
        if has_e:
            inputs.append(_r3(e))

        in_block = pl.BlockSpec((1, block_rows, LANE), lambda b, i: (b, i, 0))
        out_block = pl.BlockSpec((1, SUB, LANE), lambda b, i: (b, 0, 0))

        part = pl.pallas_call(
            _make_unmasked_kernel(has_w, has_e),
            out_shape=jax.ShapeDtypeStruct((B, SUB, LANE), jnp.float32),
            grid=(B, n_blocks),
            in_specs=[in_block] * len(inputs),
            out_specs=out_block,
            compiler_params=pltpu.CompilerParams(
                dimension_semantics=("parallel", "arbitrary"),
                vmem_limit_bytes=VMEM_LIMIT),
        )(*inputs)

        # mean over C,H,W (== successive means over dims -1,-2,-3)
        return jnp.sum(part, axis=(1, 2)) / jnp.float32(chw)


# ------------------------- demo -------------------------

if __name__ == "__main__":
    key = jax.random.PRNGKey(0)
    kx, ky, km, kw, ke = jax.random.split(key, 5)

    B, C, H, W = 2, 4, 16, 16
    X = jax.random.normal(kx, (B, C, H, W), dtype=jnp.float32)
    Y = jax.random.normal(ky, (B, C, H, W), dtype=jnp.float32)
    mask = (jax.random.uniform(km, (B, C, H, W)) > 0.5).astype(jnp.float32)
    weight = jax.random.uniform(kw, (B, C, H, W), dtype=jnp.float32)
    ema_mask = jax.random.uniform(ke, (B, C, H, W), dtype=jnp.float32)

    # masked path with all optional inputs -> scalar
    out_masked = jax.block_until_ready(
        mask_loss(X, Y, mask=mask, weight=weight, ema_mask=ema_mask))

    # masked path without weight/ema (exercises the reduced-input kernel variant)
    out_masked_min = jax.block_until_ready(mask_loss(X, Y, mask=mask))

    # unmasked path -> per-batch (B,)
    out_unmasked = jax.block_until_ready(
        mask_loss(X, Y, mask=None, weight=weight, ema_mask=ema_mask))

    # reference (plain JAX, mirrors the PyTorch semantics)
    loss = jnp.abs(X - Y) * ema_mask * weight
    ref_masked = jnp.sum(loss * mask) / (jnp.sum(mask) / mask.shape[1] * C)
    ref_masked_min = jnp.sum(jnp.abs(X - Y) * mask) / (jnp.sum(mask) / mask.shape[1] * C)
    ref_unmasked = jnp.mean(loss, axis=(1, 2, 3))

    assert jnp.allclose(out_masked, ref_masked, rtol=1e-5, atol=1e-5)
    assert jnp.allclose(out_masked_min, ref_masked_min, rtol=1e-5, atol=1e-5)
    assert jnp.allclose(out_unmasked, ref_unmasked, rtol=1e-5, atol=1e-5)

    print("KERNEL_OK")
</pallas_src>

<mosaic_0001>
module attributes {stable_mosaic.version = 11 : i64} {
  func.func @kernel(%arg0: i32, %arg1: i32, %arg2: memref<32x128xf32, #tpu.memory_space<vmem>>, %arg3: memref<32x128xf32, #tpu.memory_space<vmem>>, %arg4: memref<32x128xf32, #tpu.memory_space<vmem>>, %arg5: memref<32x128xf32, #tpu.memory_space<vmem>>, %arg6: memref<32x128xf32, #tpu.memory_space<vmem>>, %arg7: memref<8x128xf32, #tpu.memory_space<vmem>>, %arg8: memref<8x128xf32, #tpu.memory_space<vmem>>) attributes {dimension_semantics = [#tpu.dimension_semantics<parallel>, #tpu.dimension_semantics<arbitrary>], iteration_bounds = array<i64: 1, 1>, scalar_prefetch = 0 : i64, scratch_operands = 0 : i64, tpu.core_type = #tpu.core_type<tc>, window_params = [{transform_indices = @transform_0, window_bounds = array<i64: 32, 128>}, {transform_indices = @transform_1, window_bounds = array<i64: 32, 128>}, {transform_indices = @transform_2, window_bounds = array<i64: 32, 128>}, {transform_indices = @transform_3, window_bounds = array<i64: 32, 128>}, {transform_indices = @transform_4, window_bounds = array<i64: 32, 128>}, {transform_indices = @transform_5, window_bounds = array<i64: 8, 128>}, {transform_indices = @transform_6, window_bounds = array<i64: 8, 128>}]} {
    %c0_i32 = arith.constant 0 : i32
    %0 = arith.cmpi eq, %arg1, %c0_i32 : i32
    %1 = arith.extui %0 : i1 to i32
    %c0_i32_0 = arith.constant 0 : i32
    %2 = arith.cmpi ne, %1, %c0_i32_0 : i32
    scf.if %2 {
      %cst_19 = arith.constant 0.000000e+00 : f32
      %23 = vector.broadcast %cst_19 : f32 to vector<8x128xf32>
      %c0_20 = arith.constant 0 : index
      %c0_21 = arith.constant 0 : index
      %24 = vector.load %arg7[%c0_20, %c0_21] : memref<8x128xf32, #tpu.memory_space<vmem>>, vector<8x128xf32>
      tpu.vector_store %arg7[%c0_20, %c0_21], %23 {strides = array<i32>} : memref<8x128xf32, #tpu.memory_space<vmem>>, vector<8x128xf32>,
      %cst_22 = arith.constant 0.000000e+00 : f32
      %25 = vector.broadcast %cst_22 : f32 to vector<8x128xf32>
      %c0_23 = arith.constant 0 : index
      %c0_24 = arith.constant 0 : index
      %26 = vector.load %arg8[%c0_23, %c0_24] : memref<8x128xf32, #tpu.memory_space<vmem>>, vector<8x128xf32>
      tpu.vector_store %arg8[%c0_23, %c0_24], %25 {strides = array<i32>} : memref<8x128xf32, #tpu.memory_space<vmem>>, vector<8x128xf32>,
    } else {
    }
    %c0 = arith.constant 0 : index
    %c0_1 = arith.constant 0 : index
    %3 = vector.load %arg2[%c0, %c0_1] : memref<32x128xf32, #tpu.memory_space<vmem>>, vector<32x128xf32>
    %c0_2 = arith.constant 0 : index
    %c0_3 = arith.constant 0 : index
    %4 = vector.load %arg3[%c0_2, %c0_3] : memref<32x128xf32, #tpu.memory_space<vmem>>, vector<32x128xf32>
    %5 = arith.subf %3, %4 : vector<32x128xf32>
    %6 = math.absf %5 : vector<32x128xf32>
    %c0_4 = arith.constant 0 : index
    %c0_5 = arith.constant 0 : index
    %7 = vector.load %arg6[%c0_4, %c0_5] : memref<32x128xf32, #tpu.memory_space<vmem>>, vector<32x128xf32>
    %8 = arith.mulf %6, %7 : vector<32x128xf32>
    %c0_6 = arith.constant 0 : index
    %c0_7 = arith.constant 0 : index
    %9 = vector.load %arg5[%c0_6, %c0_7] : memref<32x128xf32, #tpu.memory_space<vmem>>, vector<32x128xf32>
    %10 = arith.mulf %8, %9 : vector<32x128xf32>
    %c0_8 = arith.constant 0 : index
    %c0_9 = arith.constant 0 : index
    %11 = vector.load %arg4[%c0_8, %c0_9] : memref<32x128xf32, #tpu.memory_space<vmem>>, vector<32x128xf32>
    %12 = arith.mulf %10, %11 : vector<32x128xf32>
    %c0_10 = arith.constant 0 : index
    %c0_11 = arith.constant 0 : index
    %13 = vector.load %arg7[%c0_10, %c0_11] : memref<8x128xf32, #tpu.memory_space<vmem>>, vector<8x128xf32>
    %14 = vector.shape_cast %12 : vector<32x128xf32> to vector<4x8x128xf32>
    %cst = arith.constant dense<0.000000e+00> : vector<8x128xf32>
    %15 = vector.multi_reduction <add>, %14, %cst [0] : vector<4x8x128xf32> to vector<8x128xf32>
    %16 = arith.addf %13, %15 : vector<8x128xf32>
    %c0_12 = arith.constant 0 : index
    %c0_13 = arith.constant 0 : index
    %17 = vector.load %arg7[%c0_12, %c0_13] : memref<8x128xf32, #tpu.memory_space<vmem>>, vector<8x128xf32>
    tpu.vector_store %arg7[%c0_12, %c0_13], %16 {strides = array<i32>} : memref<8x128xf32, #tpu.memory_space<vmem>>, vector<8x128xf32>,
    %c0_14 = arith.constant 0 : index
    %c0_15 = arith.constant 0 : index
    %18 = vector.load %arg8[%c0_14, %c0_15] : memref<8x128xf32, #tpu.memory_space<vmem>>, vector<8x128xf32>
    %19 = vector.shape_cast %11 : vector<32x128xf32> to vector<4x8x128xf32>
    %cst_16 = arith.constant dense<0.000000e+00> : vector<8x128xf32>
    %20 = vector.multi_reduction <add>, %19, %cst_16 [0] : vector<4x8x128xf32> to vector<8x128xf32>
    %21 = arith.addf %18, %20 : vector<8x128xf32>
    %c0_17 = arith.constant 0 : index
    %c0_18 = arith.constant 0 : index
    %22 = vector.load %arg8[%c0_17, %c0_18] : memref<8x128xf32, #tpu.memory_space<vmem>>, vector<8x128xf32>
    tpu.vector_store %arg8[%c0_17, %c0_18], %21 {strides = array<i32>} : memref<8x128xf32, #tpu.memory_space<vmem>>, vector<8x128xf32>,
    return
  }
  func.func @transform_0(%arg0: i32, %arg1: i32) -> (i32, i32) {
    %c1_i32 = arith.constant 1 : i32
    %0 = arith.muli %arg0, %c1_i32 : i32
    %1 = arith.addi %0, %arg1 : i32
    %c0_i32 = arith.constant 0 : i32
    %c0_i32_0 = arith.constant 0 : i32
    return %1, %c0_i32 : i32, i32
  }
  func.func @transform_1(%arg0: i32, %arg1: i32) -> (i32, i32) {
    %c1_i32 = arith.constant 1 : i32
    %0 = arith.muli %arg0, %c1_i32 : i32
    %1 = arith.addi %0, %arg1 : i32
    %c0_i32 = arith.constant 0 : i32
    %c0_i32_0 = arith.constant 0 : i32
    return %1, %c0_i32 : i32, i32
  }
  func.func @transform_2(%arg0: i32, %arg1: i32) -> (i32, i32) {
    %c1_i32 = arith.constant 1 : i32
    %0 = arith.muli %arg0, %c1_i32 : i32
    %1 = arith.addi %0, %arg1 : i32
    %c0_i32 = arith.constant 0 : i32
    %c0_i32_0 = arith.constant 0 : i32
    return %1, %c0_i32 : i32, i32
  }
  func.func @transform_3(%arg0: i32, %arg1: i32) -> (i32, i32) {
    %c1_i32 = arith.constant 1 : i32
    %0 = arith.muli %arg0, %c1_i32 : i32
    %1 = arith.addi %0, %arg1 : i32
    %c0_i32 = arith.constant 0 : i32
    %c0_i32_0 = arith.constant 0 : i32
    return %1, %c0_i32 : i32, i32
  }
  func.func @transform_4(%arg0: i32, %arg1: i32) -> (i32, i32) {
    %c1_i32 = arith.constant 1 : i32
    %0 = arith.muli %arg0, %c1_i32 : i32
    %1 = arith.addi %0, %arg1 : i32
    %c0_i32 = arith.constant 0 : i32
    %c0_i32_0 = arith.constant 0 : i32
    return %1, %c0_i32 : i32, i32
  }
  func.func @transform_5(%arg0: i32, %arg1: i32) -> (i32, i32) {
    %c0_i32 = arith.constant 0 : i32
    %c0_i32_0 = arith.constant 0 : i32
    return %arg0, %c0_i32 : i32, i32
  }
  func.func @transform_6(%arg0: i32, %arg1: i32) -> (i32, i32) {
    %c0_i32 = arith.constant 0 : i32
    %c0_i32_0 = arith.constant 0 : i32
    return %arg0, %c0_i32 : i32, i32
  }
}

</mosaic_0001>

<bundles_post_ra>
// kernel: tpu_custom_call.1
= control target key start
LH: loop header
LB: loop body
LE: loop exit
PB: predicated region body
PF: predicated region fallthrough
CT: control target
= control target key end

     0   :  { %12 = vsyncpa [#allocation3], 0  ;;  %s451_s0 = inlined_call_operand.hbm [shape: f32[32,128], index: 0, kind: input, shape index: {}]   ;;  %s452_s1 = inlined_call_operand.hbm [shape: f32[32,128], index: 1, kind: input, shape index: {}]   ;;  %s453_s2 = inlined_call_operand.hbm [shape: f32[32,128], index: 2, kind: input, shape index: {}]   ;;  %s454_s3 = inlined_call_operand.hbm [shape: f32[32,128], index: 3, kind: input, shape index: {}]   ;;  %s455_s4 = inlined_call_operand.hbm [shape: f32[32,128], index: 4, kind: input, shape index: {}]   ;;  %s456_s5 = inlined_call_operand.hbm [shape: f32[8,128], index: 5, kind: output, shape index: {0}]   ;;  %s457_s6 = inlined_call_operand.hbm [shape: f32[8,128], index: 6, kind: output, shape index: {1}]  }
   0x1   :  { %13 = vsyncpa [#allocation6], 0 }
   0x2   :  { %14 = vsyncpa [#allocation9], 0 }
   0x3   :  { %15 = vsyncpa [#allocation4], 0 }
   0x4   :  { %16 = vsyncpa [#allocation13], 0  ;;  %s371_s21 = smov [#allocation5]   ;;  %s372_s23 = smov [#allocation8]  }
   0x5   :  { %s42_s22 = sshll.u32 %s371_s21, 4  ;;  %s74_s24 = sshll.u32 %s372_s23, 4  ;;  %s43_s22 = int_to_ptr.vmem [resolvable:$true] %s42_s22  ;;  %s75_s24 = int_to_ptr.vmem [resolvable:$true] %s74_s24 }
   0x6   :  { %s229_s25 = scalar_lea.vmem %s43_s22, 512  ;;  %p234_p1 = scmp.lt.s32.totalorder %s43_s22, %s43_s22 }
   0x7   :  { %p230_p0 = scmp.ne.s32.totalorder %s43_s22, %s229_s25  ;;  %p235_p2 = scmp.lt.s32.totalorder %s229_s25, %s229_s25 }
   0x9   :  { %p236_p3 = por %p235_p2, %p234_p1 }
   0xb   :  { %p237_p4 = pnand %p236_p3, %p230_p0 }
   0xd   :  { %240 = shalt.err (!%p237_p4)
}
   0xe   :  { %s373_s26 = smov 128   ;;  %s374_s27 = smov 8  }
   0xf   :  { %48 = dma.hbm_to_vmem [thread:$0]  %s452_s1, 512, %s43_s22, [#allocation6], %s373_s26, %s373_s26, %s374_s27  }
  0x10   :  { %s249_s30 = scalar_lea.vmem %s75_s24, 512  ;;  %p254_p6 = scmp.lt.s32.totalorder %s75_s24, %s75_s24 }
  0x11   :  { %p250_p5 = scmp.ne.s32.totalorder %s75_s24, %s249_s30  ;;  %p255_p7 = scmp.lt.s32.totalorder %s249_s30, %s249_s30 }
  0x13   :  { %p256_p8 = por %p255_p7, %p254_p6 }
  0x15   :  { %p257_p9 = pnand %p256_p8, %p250_p5 }
  0x17   :  { %260 = shalt.err (!%p257_p9)
}
  0x18   :  { %80 = dma.hbm_to_vmem [thread:$0]  %s454_s3, 512, %s75_s24, [#allocation9], %s373_s26, %s373_s26, %s374_s27  }
  0x19   :  { %s375_s9 = smov [#allocation2]   ;;  %s376_s11 = smov [#allocation7]  }
  0x1a   :  { %s26_s10 = sshll.u32 %s375_s9, 4  ;;  %s58_s12 = sshll.u32 %s376_s11, 4  ;;  %s27_s10 = int_to_ptr.vmem [resolvable:$true] %s26_s10  ;;  %s59_s12 = int_to_ptr.vmem [resolvable:$true] %s58_s12 }
  0x1b   :  { %s269_s1 = scalar_lea.vmem %s27_s10, 512  ;;  %p274_p11 = scmp.lt.s32.totalorder %s27_s10, %s27_s10 }
  0x1c   :  { %p270_p10 = scmp.ne.s32.totalorder %s27_s10, %s269_s1  ;;  %p275_p12 = scmp.lt.s32.totalorder %s269_s1, %s269_s1 }
  0x1e   :  { %p276_p13 = por %p275_p12, %p274_p11 }
  0x20   :  { %p277_p0 = pnand %p276_p13, %p270_p10 }
  0x22   :  { %280 = shalt.err (!%p277_p0)
}
  0x23   :  { %32 = dma.hbm_to_vmem [thread:$0]  %s451_s0, 512, %s27_s10, [#allocation3], %s373_s26, %s373_s26, %s374_s27  }
  0x24   :  { %s289_s3 = scalar_lea.vmem %s59_s12, 512  ;;  %p294_p2 = scmp.lt.s32.totalorder %s59_s12, %s59_s12 }
  0x25   :  { %p290_p1 = scmp.ne.s32.totalorder %s59_s12, %s289_s3  ;;  %p295_p3 = scmp.lt.s32.totalorder %s289_s3, %s289_s3 }
  0x27   :  { %p296_p4 = por %p295_p3, %p294_p2 }
  0x29   :  { %p297_p5 = pnand %p296_p4, %p290_p1 }
  0x2b   :  { %300 = shalt.err (!%p297_p5)
}
  0x2c   :  { %64 = dma.hbm_to_vmem [thread:$0]  %s453_s2, 512, %s59_s12, [#allocation6], %s373_s26, %s373_s26, %s374_s27  }
  0x2d   :  { %s377_s17 = smov [#allocation10]  }
  0x2e   :  { %s90_s18 = sshll.u32 %s377_s17, 4  ;;  %s91_s18 = int_to_ptr.vmem [resolvable:$true] %s90_s18 }
  0x2f   :  { %s309_s19 = scalar_lea.vmem %s91_s18, 512  ;;  %p314_p7 = scmp.lt.s32.totalorder %s91_s18, %s91_s18 }
  0x30   :  { %p310_p6 = scmp.ne.s32.totalorder %s91_s18, %s309_s19  ;;  %p315_p8 = scmp.lt.s32.totalorder %s309_s19, %s309_s19 }
  0x32   :  { %p316_p9 = por %p315_p8, %p314_p7 }
  0x34   :  { %p317_p10 = pnand %p316_p9, %p310_p6 }
  0x36   :  { %320 = shalt.err (!%p317_p10)
}
  0x37   :  { %96 = dma.hbm_to_vmem [thread:$0]  %s455_s4, 512, %s91_s18, [#allocation9], %s373_s26, %s373_s26, %s374_s27  }
  0x38   :  { %361 = dma.done.wait [#allocation3], 512  }
  0x39   :  { %362 = vsyncadd [#allocation3], 4294966784 }
  0x3a   :  { %363 = dma.done.wait [#allocation6], 1024  }
  0x3b   :  { %364 = vsyncadd [#allocation6], 4294966272 }
  0x3c   :  { %365 = dma.done.wait [#allocation9], 1024  }
  0x3d   :  { %366 = vsyncadd [#allocation9], 4294966272  ;;  %v128_v0 = vld [vmem:[#allocation2] sm:$0xff]  ;;  %v129_v1 = vld [vmem:[#allocation2 + $0x8] sm:$0xff]  ;;  %s378_s2 = smov [#allocation12]   ;;  %s379_s21 = smov [#allocation11]  }
  0x3e   :  { %v130_v2 = vld [vmem:[#allocation2 + $0x10] sm:$0xff]  ;;  %v131_v3 = vld [vmem:[#allocation2 + $0x18] sm:$0xff]  ;;  %v132_v4 = vld [vmem:[#allocation5] sm:$0xff]  ;;  %s196_s4 = sshll.u32 %s378_s2, 4  ;;  %s186_s22 = sshll.u32 %s379_s21, 4  ;;  %s197_s4 = int_to_ptr.vmem [resolvable:$true] %s196_s4  ;;  %s187_s22 = int_to_ptr.vmem [resolvable:$true] %s186_s22 }
  0x3f   :  { %v133_v5 = vld [vmem:[#allocation5 + $0x8] sm:$0xff]  ;;  %v134_v6 = vld [vmem:[#allocation5 + $0x10] sm:$0xff]  ;;  %v135_v7 = vld [vmem:[#allocation5 + $0x18] sm:$0xff]  ;;  %v136_v8 = vsub.f32 %v128_v0, %v132_v4  ;;  %s321_s23 = scalar_lea.vmem %s197_s4, 128  ;;  %p326_p12 = scmp.lt.s32.totalorder %s197_s4, %s197_s4 }
  0x40   :  { %v137_v9 = vsub.f32 %v129_v1, %v133_v5  ;;  %v138_v10 = vsub.f32 %v130_v2, %v134_v6  ;;  %v139_v11 = vsub.f32 %v131_v3, %v135_v7  ;;  %v144_v12 = vld [vmem:[#allocation10] sm:$0xff]  ;;  %v145_v13 = vld [vmem:[#allocation10 + $0x8] sm:$0xff]  ;;  %v146_v14 = vld [vmem:[#allocation10 + $0x10] sm:$0xff]  ;;  %p322_p11 = scmp.ne.s32.totalorder %s197_s4, %s321_s23  ;;  %p327_p13 = scmp.lt.s32.totalorder %s321_s23, %s321_s23 }
  0x41   :  { %v140_v15 = vand.u32 2147483647, %v136_v8  ;;  %v147_v17 = vld [vmem:[#allocation10 + $0x18] sm:$0xff]  ;;  %v152_v18 = vld [vmem:[#allocation8] sm:$0xff]  ;;  %v153_v21 = vld [vmem:[#allocation8 + $0x8] sm:$0xff] }
  0x42   :  { %v141_v16 = vand.u32 2147483647, %v137_v9  ;;  %v142_v19 = vand.u32 2147483647, %v138_v10  ;;  %v143_v20 = vand.u32 2147483647, %v139_v11  ;;  %p328_p0 = por %p327_p13, %p326_p12 }
  0x43   :  { %v154_v22 = vld [vmem:[#allocation8 + $0x10] sm:$0xff]  ;;  %v148_v23 = vmul.f32 %v144_v12, %v140_v15  ;;  %v155_v25 = vld [vmem:[#allocation8 + $0x18] sm:$0xff]  ;;  %v160_v26 = vld [vmem:[#allocation7] sm:$0xff] }
  0x44   :  { %v149_v24 = vmul.f32 %v145_v13, %v141_v16  ;;  %v161_v27 = vld [vmem:[#allocation7 + $0x8] sm:$0xff]  ;;  %v150_v28 = vmul.f32 %v146_v14, %v142_v19  ;;  %v151_v29 = vmul.f32 %v147_v17, %v143_v20  ;;  %v162_v33 = vld [vmem:[#allocation7 + $0x10] sm:$0xff]  ;;  %v163_v36 = vld [vmem:[#allocation7 + $0x18] sm:$0xff]  ;;  %p329_p1 = pnand %p328_p0, %p322_p11 }
  0x45   :  { %v175_v30 = vadd.f32 %v161_v27, %v160_v26  ;;  %v156_v31 = vmul.f32 %v152_v18, %v148_v23 }
  0x46   :  { %v157_v32 = vmul.f32 %v153_v21, %v149_v24  ;;  %v158_v34 = vmul.f32 %v154_v22, %v150_v28  ;;  %v159_v35 = vmul.f32 %v155_v25, %v151_v29 }
  0x47   :  { %v176_v37 = vadd.f32 %v175_v30, %v162_v33  ;;  %v164_v38 = vmul.f32 %v160_v26, %v156_v31 }
  0x48   :  { %v165_v39 = vmul.f32 %v161_v27, %v157_v32  ;;  %v166_v40 = vmul.f32 %v162_v33, %v158_v34  ;;  %v167_v42 = vmul.f32 %v163_v36, %v159_v35 }
  0x49   :  { %v177_v41 = vadd.f32 %v176_v37, %v163_v36 }
  0x4a   :  { %v169_v43 = vadd.f32 %v165_v39, %v164_v38 }
  0x4b   :  { %179 = vst [vmem:[#allocation12] sm:$0xff] %v177_v41 }
  0x4c   :  { %v170_v44 = vadd.f32 %v169_v43, %v166_v40 }
  0x4e   :  { %v171_v45 = vadd.f32 %v170_v44, %v167_v42 }
  0x4f   :  { %332 = shalt.err (!%p329_p1)
}
  0x50   :  { %199 = dma.vmem_to_hbm [thread:$0]  %s197_s4, 128, %s457_s6, [#allocation13]   ;;  %173 = vst [vmem:[#allocation11] sm:$0xff] %v171_v45 }
  0x51   :  { %s341_s26 = scalar_lea.vmem %s187_s22, 128  ;;  %p346_p3 = scmp.lt.s32.totalorder %s187_s22, %s187_s22 }
  0x52   :  { %p342_p2 = scmp.ne.s32.totalorder %s187_s22, %s341_s26  ;;  %p347_p4 = scmp.lt.s32.totalorder %s341_s26, %s341_s26 }
  0x54   :  { %p348_p5 = por %p347_p4, %p346_p3 }
  0x56   :  { %p349_p6 = pnand %p348_p5, %p342_p2 }
  0x58   :  { %352 = shalt.err (!%p349_p6)
}
  0x59   :  { %189 = dma.vmem_to_hbm [thread:$0]  %s187_s22, 128, %s456_s5, [#allocation4]  }
  0x5a   :  { %367 = dma.done.wait [#allocation4], 128  }
  0x5b   :  { %368 = vsyncadd [#allocation4], 4294967168 }
  0x5c   :  { %369 = dma.done.wait [#allocation13], 128  }
  0x5d   :  { %370 = vsyncadd [#allocation13], 4294967168 }
  0x5e   :  { %206 = vsyncpa [#allocation3], 1 }
  0x5f   :  { %207 = vsyncpa [#allocation6], 1 }
  0x60   :  { %208 = vsyncpa [#allocation9], 1 }
  0x61   :  { %209 = vsyncpa [#allocation4], 1 }
  0x62   :  { %210 = vsyncpa [#allocation13], 1 }

</bundles_post_ra>
